<compile_context>
chip_gen: v5e
topology: v5e:2x2
jax: 0.10.0
libtpu: 0.0.40
codegen_flags: <defaults>
</compile_context>

<pallas_src>
import functools

import jax
import jax.numpy as jnp
from jax import lax
from jax.experimental import pallas as pl
from jax.experimental.pallas import tpu as pltpu


# ----------------------------------------------------------------------------
# pltpu.roll rotation-direction probe (run once).  We need y[:, m] = x[:, m+s];
# under jnp.roll's convention (element i moves to i+shift) that is shift = -s.
# Detecting the convention empirically on an iota ramp makes the stencil
# shifts robust regardless of the convention Mosaic implements.
# ----------------------------------------------------------------------------
def _roll_probe_kernel(x_ref, o_ref):
    o_ref[...] = pltpu.roll(x_ref[...], 1, axis=1)


@functools.lru_cache(maxsize=None)
def _roll_is_jnp_convention() -> bool:
    x = lax.broadcasted_iota(jnp.float32, (8, 128), 1)
    y = pl.pallas_call(
        _roll_probe_kernel,
        out_shape=jax.ShapeDtypeStruct((8, 128), jnp.float32),
    )(x)
    # 127.0 under the jnp.roll convention, 1.0 under the opposite one.
    return bool(y[0, 0] > 1.0)


# ----------------------------------------------------------------------------
# Fused kernel: MaxPool2d(2) -> [conv1+BN1+ReLU -> conv2+BN2+ReLU] + identity
# conv residual -> ReLU, all on (C, M) lane-dense maps with M = N*H*W.
# ----------------------------------------------------------------------------
def _encoder_block_kernel(x_ref, wA_ref, b1_ref, wB_ref, b2_ref, o_ref,
                          *, H, W, roll_is_jnp):
    # Shapes (static):
    #   x_ref : (4, Cin, M)      the 2x2 pooling-window taps on the lead axis
    #   wA_ref: (9, 2*Cout, Cin) conv1 (BN1-scale folded) ++ identity, per tap
    #   wB_ref: (9, Cout, Cout)  conv2 (BN2-scale folded), per tap
    #   b1,b2 : (Cout, 1)        folded BatchNorm biases (f32)
    #   o_ref : (Cout, M)        lane-dense output
    Cout, M = o_ref.shape

    # Per-lane spatial coordinates of the flattened index m = n*H*W + h*W + w.
    lane = lax.broadcasted_iota(jnp.int32, (1, M), 1)
    h_of = (lane // W) % H
    w_of = lane % W

    # Border-validity mask per tap (shared by both convs): a flat lane shift by
    # s = ky*W + kx only equals the spatially shifted pixel while it stays in
    # the same row / image; everything else is the conv's zero padding.
    offs, valid = [], []
    for k in range(9):
        ky, kx = divmod(k, 3)
        ky -= 1
        kx -= 1
        offs.append(ky * W + kx)
        valid.append((h_of + ky >= 0) & (h_of + ky < H) &
                     (w_of + kx >= 0) & (w_of + kx < W))

    def shift_lanes(v, s):
        # y[:, m] = v[:, (m + s) % M]; wrapped lanes are masked to zero later.
        if s == 0:
            return v
        amt = (-s) % M if roll_is_jnp else s % M
        return pltpu.roll(v, amt, axis=1)

    def conv3x3(src, w_taps_ref, out_ch):
        # src: (C, M) f32.  9 tiny MXU pushes; the shifts ride the XLU slot
        # and the masks the VPU, both of which have plenty of slack here.
        acc = jnp.zeros((out_ch, M), jnp.float32)
        for k in range(9):
            tap = jnp.where(valid[k], shift_lanes(src, offs[k]), 0.0)
            acc = acc + jnp.dot(w_taps_ref[k], tap.astype(jnp.bfloat16),
                                preferred_element_type=jnp.float32)
        return acc

    # ---- MaxPool2d(2): the four window taps sit on the leading input axis ---
    pooled = jnp.maximum(jnp.maximum(x_ref[0], x_ref[1]),
                         jnp.maximum(x_ref[2], x_ref[3]))        # (Cin, M) f32

    # ---- conv1 (BN1 scale pre-folded) fused with the identity conv ----------
    yr = conv3x3(pooled, wA_ref, 2 * Cout)                       # (2*Cout, M)
    y1 = jnp.maximum(yr[:Cout] + b1_ref[...], 0.0)               # BN1 bias + ReLU
    res = yr[Cout:]                                              # identity (f32)

    # ---- conv2 (BN2 scale pre-folded) + BN2 bias + ReLU ----------------------
    y2 = conv3x3(y1, wB_ref, Cout)                               # (Cout, M)
    y2 = jnp.maximum(y2 + b2_ref[...], 0.0)

    # Residual add + final ReLU: (Cout, 128) is an unmasked lane-dense store.
    o_ref[...] = jnp.maximum(y2 + res, 0.0)


def _to_taps(w):
    """torch OIHW (O, I, 3, 3) -> (9, O, I), tap-major (k = ky*3 + kx)."""
    return jnp.transpose(w, (2, 3, 0, 1)).reshape(9, w.shape[0], w.shape[1])


def encoder_block_forward(x_nchw, params):
    """x_nchw: (N, Cin, Hin, Win) float32.  Returns (N, Cout, Hin//2, Win//2)."""
    (w1, g1, be1, m1, v1, w2, g2, be2, m2, v2, wid) = params
    eps = 1e-5
    N, Cin, Hin, Win = x_nchw.shape
    assert Hin % 2 == 0 and Win % 2 == 0
    H, W = Hin // 2, Win // 2
    Cout = w1.shape[0]
    M = N * H * W

    # --- host-side layout prep (tiny tensors; a single fused XLA transpose) ---
    # Split the 2x2 pooling window onto a leading axis and flatten (n, h, w)
    # into one length-M axis that becomes the 128-wide lane dimension.
    xt = jnp.transpose(x_nchw.reshape(N, Cin, H, 2, W, 2), (3, 5, 1, 0, 2, 4))
    x_in = xt.reshape(4, Cin, M).astype(jnp.float32)

    # Fold BatchNorm (eval-mode running stats): scale into the weights, bias
    # stays as a per-channel add in the kernel.
    def fold_bn(gamma, beta, mean, var):
        s = gamma / jnp.sqrt(var + eps)
        return (s.astype(jnp.float32),
                (beta - mean * s).reshape(-1, 1).astype(jnp.float32))

    s1, b1 = fold_bn(g1, be1, m1, v1)
    s2, b2 = fold_bn(g2, be2, m2, v2)

    # conv1 and the identity conv share the same shifted taps -> fuse their
    # weights along the output-channel axis.  bf16 operands for the MXU.
    wA = jnp.concatenate([s1[None, :, None] * _to_taps(w1), _to_taps(wid)],
                         axis=1).astype(jnp.bfloat16)            # (9, 2*Cout, Cin)
    wB = (s2[None, :, None] * _to_taps(w2)).astype(jnp.bfloat16)  # (9, Cout, Cout)

    kernel = functools.partial(_encoder_block_kernel, H=H, W=W,
                               roll_is_jnp=_roll_is_jnp_convention())

    out = pl.pallas_call(
        kernel,
        out_shape=jax.ShapeDtypeStruct((Cout, M), jnp.float32),
        grid_spec=pltpu.PrefetchScalarGridSpec(
            num_scalar_prefetch=0,
            grid=(1,),   # whole problem in one step; < 100 KiB of VMEM
            in_specs=[
                pl.BlockSpec((4, Cin, M), lambda i: (0, 0, 0)),
                pl.BlockSpec((9, 2 * Cout, Cin), lambda i: (0, 0, 0)),
                pl.BlockSpec((Cout, 1), lambda i: (0, 0)),
                pl.BlockSpec((9, Cout, Cout), lambda i: (0, 0, 0)),
                pl.BlockSpec((Cout, 1), lambda i: (0, 0)),
            ],
            out_specs=pl.BlockSpec((Cout, M), lambda i: (0, 0)),
        ),
        compiler_params=pltpu.CompilerParams(
            dimension_semantics=("arbitrary",),
            # Actual need is ~100 KiB; a tight explicit budget leaves headroom
            # for neighbouring fusions on every generation (v7x: 64 MiB/TC).
            vmem_limit_bytes=4 * 1024 * 1024),
    )(x_in, wA, b1, wB, b2)

    # (Cout, N*H*W) -> NCHW on the host (4 KiB tensor; free / fused by XLA).
    return jnp.transpose(out.reshape(Cout, N, H, W), (1, 0, 2, 3))


def ref_forward(x, params):
    """Pure-JAX reference matching PyTorch EncoderBlock forward (BN in eval)."""
    w1, g1, be1, m1, v1, w2, g2, be2, m2, v2, wid = params
    eps = 1e-5
    N, C, Hh, Ww = x.shape
    xp = x.reshape(N, C, Hh // 2, 2, Ww // 2, 2).max(axis=(3, 5))

    def conv(a, w):
        return lax.conv_general_dilated(
            a, w, (1, 1), ((1, 1), (1, 1)),
            dimension_numbers=("NCHW", "OIHW", "NCHW"),
            precision=lax.Precision.HIGHEST)

    def bn(a, g, b, m, v):
        s = (g / jnp.sqrt(v + eps))[None, :, None, None]
        return (a - m[None, :, None, None]) * s + b[None, :, None, None]

    y = jax.nn.relu(bn(conv(xp, w1), g1, be1, m1, v1))
    y = jax.nn.relu(bn(conv(y, w2), g2, be2, m2, v2))
    r = conv(xp, wid)
    return jax.nn.relu(y + r)


if __name__ == "__main__":
    key = jax.random.PRNGKey(0)
    keys = jax.random.split(key, 6)
    N, Cin, Cout, Hin, Win = 2, 4, 8, 16, 16

    x = jax.random.normal(keys[0], (N, Cin, Hin, Win), dtype=jnp.float32)

    # Conv weights ~ N(0, 0.2^2); BatchNorm with mildly non-default running
    # stats so the scale/bias folding paths are actually exercised.
    w1 = 0.2 * jax.random.normal(keys[1], (Cout, Cin, 3, 3), dtype=jnp.float32)
    w2 = 0.2 * jax.random.normal(keys[2], (Cout, Cout, 3, 3), dtype=jnp.float32)
    wid = 0.2 * jax.random.normal(keys[3], (Cout, Cin, 3, 3), dtype=jnp.float32)

    def bn_params(k):
        kg, kb, km, kv = jax.random.split(k, 4)
        gamma = 1.0 + 0.1 * jax.random.normal(kg, (Cout,), dtype=jnp.float32)
        beta = 0.1 * jax.random.normal(kb, (Cout,), dtype=jnp.float32)
        mean = 0.1 * jax.random.normal(km, (Cout,), dtype=jnp.float32)
        var = 1.0 + 0.1 * jnp.abs(jax.random.normal(kv, (Cout,), dtype=jnp.float32))
        return gamma, beta, mean, var

    g1, be1, m1, v1 = bn_params(keys[4])
    g2, be2, m2, v2 = bn_params(keys[5])
    params = (w1, g1, be1, m1, v1,   # conv1 + BN1 (gamma, beta, mean, var)
              w2, g2, be2, m2, v2,   # conv2 + BN2
              wid)                   # identity conv

    out = jax.block_until_ready(encoder_block_forward(x, params))
    ref = jax.block_until_ready(ref_forward(x, params))

    assert out.shape == (N, Cout, Hin // 2, Win // 2), out.shape
    max_err = float(jnp.max(jnp.abs(out - ref)))
    # bf16 matmul operands vs. the f32/HIGHEST-precision reference: expected
    # max abs error ~1e-2 at these magnitudes; 5e-2 keeps >3x headroom while
    # still catching structural bugs (those produce O(1) errors).
    assert max_err < 5e-2, f"max abs error too large: {max_err}"
    print("KERNEL_OK")
</pallas_src>

<mosaic_0001>
module attributes {stable_mosaic.version = 11 : i64} {
  func.func @_roll_probe_kernel(%arg0: memref<8x128xf32, #tpu.memory_space<vmem>>, %arg1: memref<8x128xf32, #tpu.memory_space<vmem>>) attributes {dimension_semantics = [], scalar_prefetch = 0 : i64, scratch_operands = 0 : i64, tpu.core_type = #tpu.core_type<tc>} {
    %c0 = arith.constant 0 : index
    %c0_0 = arith.constant 0 : index
    %0 = vector.load %arg0[%c0, %c0_0] : memref<8x128xf32, #tpu.memory_space<vmem>>, vector<8x128xf32>
    %c1_i32 = arith.constant 1 : i32
    %1 = tpu.dynamic_rotate %0 by %c1_i32 dim 1 : vector<8x128xf32>, i32 -> vector<8x128xf32>
    %c0_1 = arith.constant 0 : index
    %c0_2 = arith.constant 0 : index
    %2 = vector.load %arg1[%c0_1, %c0_2] : memref<8x128xf32, #tpu.memory_space<vmem>>, vector<8x128xf32>
    tpu.vector_store %arg1[%c0_1, %c0_2], %1 {strides = array<i32>} : memref<8x128xf32, #tpu.memory_space<vmem>>, vector<8x128xf32>,
    return
  }
}

</mosaic_0001>

<bundles_post_ra>
// kernel: tpu_custom_call.1
= control target key start
LH: loop header
LB: loop body
LE: loop exit
PB: predicated region body
PF: predicated region fallthrough
CT: control target
= control target key end

     0   :  { %6 = vsyncpa [#allocation3], 0  ;;  %s118_s0 = inlined_call_operand.hbm [shape: f32[8,128], index: 0, kind: input, shape index: {}]   ;;  %s119_s1 = inlined_call_operand.hbm [shape: f32[8,128], index: 1, kind: output, shape index: {}]  }
   0x1   :  { %7 = vsyncpa [#allocation4], 0  ;;  %s13_s8 = sshll.u32 %s118_s0, 4  ;;  %s99_s9 = smov [#allocation2]   ;;  %s14_s8 = int_to_ptr.hbm [resolvable:$true] %s13_s8 }
   0x2   :  { %s15_s10 = sshll.u32 %s99_s9, 4  ;;  %s16_s10 = int_to_ptr.vmem [resolvable:$true] %s15_s10 }
   0x3   :  { %18 = dma.hbm_to_vmem [thread:$0]  %s14_s8, 128, %s16_s10, [#allocation3]  }
   0x4   :  { %95 = dma.done.wait [#allocation3], 128  }
   0x5   :  { %96 = vsyncadd [#allocation3], 4294967168  ;;  %v23_v0 = vld [vmem:[#allocation2] sm:$0xff]  ;;  %s100_s11 = smov 1   ;;  %s101_s12 = smov [#allocation5]  }
   0x6   :  { %24 = vrot.lane.b32.xlu0 %v23_v0, %s100_s11  ;;  %s32_s13 = sshll.u32 %s101_s12, 4  ;;  %s34_s16 = sshll.u32 %s119_s1, 4  ;;  %s33_s13 = int_to_ptr.vmem [resolvable:$true] %s32_s13  ;;  %s35_s16 = int_to_ptr.hbm [resolvable:$true] %s34_s16 }
  0x78   :  { %v25_v1 = vpop.permute.xlu0 %24 }
  0x79   :  { %26 = vst [vmem:[#allocation5] sm:$0xff] %v25_v1 }
  0x7a   :  { %37 = dma.vmem_to_hbm [thread:$0]  %s33_s13, 128, %s35_s16, [#allocation4]  }
  0x7b   :  { %97 = dma.done.wait [#allocation4], 128  }
  0x7c   :  { %98 = vsyncadd [#allocation4], 4294967168 }
  0x7d   :  { %42 = vsyncpa [#allocation3], 1 }
  0x7e   :  { %43 = vsyncpa [#allocation4], 1 }

</bundles_post_ra>
